<compile_context>
chip_gen: v7x
topology: tpu7x:2x2x1
jax: 0.10.0
libtpu: 0.0.40
codegen_flags: <defaults>
</compile_context>

<pallas_src>
import jax
import jax.numpy as jnp
from jax.experimental import pallas as pl
from jax.experimental.pallas import tpu as pltpu


_SINGLE_BLOCK_BYTES = 512 * 1024        # un-tiled path only for tiny arrays
_TARGET_TILE_BYTES = 4 * 1024 * 1024    # per-array tile target (~24 MiB working set)
_VMEM_LIMIT_BYTES = 40 * 1024 * 1024    # scoped VMEM limit; < v7x 64 MiB physical
_LANE_CANDIDATES = (512, 256, 128)      # lane widths for the lane-dense slab


def _linf_kernel(delta_ref, x_pert_ref, x_ref, out_ref):
    # out = min(max(x_pert, x - delta), x + delta)
    # Matches the two masked assignments of the PyTorch forward (including the
    # degenerate lb > ub case: the upper bound wins last).
    x = x_ref[...]
    d = delta_ref[0, 0].astype(x.dtype)
    out_ref[...] = jnp.minimum(jnp.maximum(x_pert_ref[...], x - d), x + d)


def _min_sublane(dtype) -> int:
    # (sublane, 128) packing rule: 8 rows for 32-bit, 16 for bf16, 32 for int8.
    return max(8, 32 // jnp.dtype(dtype).itemsize)


def _round_up(x: int, m: int) -> int:
    return -(-x // m) * m


def _choose_lane_width(total: int):
    for lanes in _LANE_CANDIDATES:
        if total % lanes == 0:
            return lanes
    return None


def _cost(n_elems: int, itemsize: int) -> pl.CostEstimate:
    # Pure HBM-bandwidth op: 2 reads + 1 write, ~3 cheap VPU ops per element.
    return pl.CostEstimate(flops=3 * n_elems,
                           transcendentals=0,
                           bytes_accessed=3 * n_elems * itemsize)


def _row_tile(rows: int, row_bytes: int, sub: int) -> int:
    """Row-block size: ~_TARGET_TILE_BYTES per array, >=2 blocks when possible,
    even block count when tiling (balanced 2-TC split on v7x)."""
    if rows * row_bytes <= _TARGET_TILE_BYTES:
        if rows >= 2 * sub:
            return _round_up((rows + 1) // 2, sub)     # 2 parallel blocks
        return rows                                    # full extent (tiny)
    tile = max(sub, (_TARGET_TILE_BYTES // row_bytes) // sub * sub)
    blocks = pl.cdiv(rows, tile)
    if blocks > 1 and blocks % 2 == 1:
        tile = max(sub, _round_up(pl.cdiv(rows, blocks + 1), sub))
    return min(tile, rows)


def linf_project(X_pert: jax.Array, X: jax.Array, delta_smem: jax.Array) -> jax.Array:
    n, d = X_pert.shape
    dtype = X_pert.dtype
    itemsize = jnp.dtype(dtype).itemsize
    total = n * d
    total_bytes = total * itemsize

    smem_spec = pl.BlockSpec(memory_space=pltpu.MemorySpace.SMEM)
    vmem_spec = pl.BlockSpec(memory_space=pltpu.MemorySpace.VMEM)
    grid_params = pltpu.CompilerParams(dimension_semantics=("parallel",),
                                       vmem_limit_bytes=_VMEM_LIMIT_BYTES)

    # ---- tiny input: single un-tiled invocation, whole arrays in VMEM -------
    if total_bytes <= _SINGLE_BLOCK_BYTES:
        return pl.pallas_call(
            _linf_kernel,
            out_shape=jax.ShapeDtypeStruct((n, d), dtype),
            in_specs=[smem_spec, vmem_spec, vmem_spec],
            out_specs=vmem_spec,
            input_output_aliases={1: 0},
            cost_estimate=_cost(total, itemsize),
            compiler_params=pltpu.CompilerParams(vmem_limit_bytes=_VMEM_LIMIT_BYTES),
        )(delta_smem, X_pert, X)

    sub = _min_sublane(dtype)
    lanes = _choose_lane_width(total)

    # ---- lane-dense slab path (covers d % 128 != 0 and huge d) --------------
    if lanes is not None:
        rows = total // lanes
        row_bytes = lanes * itemsize
        tile_r = _row_tile(rows, row_bytes, sub)
        spec = pl.BlockSpec((tile_r, lanes), lambda i: (i, 0))
        out = pl.pallas_call(
            _linf_kernel,
            out_shape=jax.ShapeDtypeStruct((rows, lanes), dtype),
            grid=(pl.cdiv(rows, tile_r),),
            in_specs=[smem_spec, spec, spec],
            out_specs=spec,
            input_output_aliases={1: 0},
            cost_estimate=_cost(total, itemsize),
            compiler_params=grid_params,
        )(delta_smem, X_pert.reshape(rows, lanes), X.reshape(rows, lanes))
        return out.reshape(n, d)

    # ---- fallback: (n, d) layout, row tiling with full-d blocks -------------
    row_bytes = d * itemsize
    if 6 * sub * row_bytes > _VMEM_LIMIT_BYTES:
        # TODO(synk): pathological huge, non-128-divisible rows: even a minimal
        # row block would blow VMEM, so use the plain XLA elementwise clamp.
        dval = delta_smem[0, 0].astype(dtype)
        return jnp.minimum(jnp.maximum(X_pert, X - dval), X + dval)

    tile_n = _row_tile(n, row_bytes, sub)
    spec = pl.BlockSpec((tile_n, d), lambda i: (i, 0))
    return pl.pallas_call(
        _linf_kernel,
        out_shape=jax.ShapeDtypeStruct((n, d), dtype),
        grid=(pl.cdiv(n, tile_n),),
        in_specs=[smem_spec, spec, spec],
        out_specs=spec,
        input_output_aliases={1: 0},
        cost_estimate=_cost(total, itemsize),
        compiler_params=grid_params,
    )(delta_smem, X_pert, X)


class Projection:
    """JAX/Pallas port of the PyTorch Projection helper (pert_model='linf')."""

    def __init__(self, delta: float, pert_model: str, X: jax.Array):
        if pert_model != 'linf':
            raise NotImplementedError('Perturbation model not implemented.')
        self.pert_model = pert_model
        # delta lives in SMEM as a runtime scalar: changing delta (epsilon
        # schedules) never triggers a kernel recompile.
        self.delta = jnp.full((1, 1), delta, dtype=jnp.float32)
        self.X = X  # bounds are derived in-kernel: no persistent lb/ub copies
        # TODO(synk): project only for idx_adv (same ToDo as the PyTorch module).

    def __call__(self, X_pert: jax.Array) -> jax.Array:
        if self.X.dtype != X_pert.dtype:
            # One-time cast, cached — not in the steady-state per-call path.
            self.X = self.X.astype(X_pert.dtype)
        return linf_project(X_pert, self.X, self.delta)


if __name__ == "__main__":
    key = jax.random.PRNGKey(0)
    ks = jax.random.split(key, 6)
    delta = 0.1

    # Case 1: tiny matrix -> single-block (un-gridded) path.
    n1, d1 = 16, 256
    X1 = jax.random.normal(ks[0], (n1, d1), dtype=jnp.float32)
    X1_pert = X1 + 0.5 * jax.random.normal(ks[1], (n1, d1), dtype=jnp.float32)
    ref1 = jnp.clip(X1_pert, X1 - delta, X1 + delta)
    out1 = jax.block_until_ready(Projection(delta, 'linf', X1)(X1_pert))
    assert jnp.allclose(out1, ref1, atol=1e-6), "mismatch vs reference (small)"
    assert bool(jnp.all(out1 >= X1 - delta - 1e-6))
    assert bool(jnp.all(out1 <= X1 + delta + 1e-6))

    # Case 2: larger, 128-multiple d -> tiled lane-dense grid path (2 blocks).
    n2, d2 = 4096, 512
    X2 = jax.random.normal(ks[2], (n2, d2), dtype=jnp.float32)
    X2_pert = X2 + 0.5 * jax.random.normal(ks[3], (n2, d2), dtype=jnp.float32)
    ref2 = jnp.clip(X2_pert, X2 - delta, X2 + delta)
    out2 = jax.block_until_ready(Projection(delta, 'linf', X2)(X2_pert))
    assert jnp.allclose(out2, ref2, atol=1e-6), "mismatch vs reference (tiled)"

    # Case 3: d not a multiple of 128 -> flattened lane-dense (rows, 512) path.
    n3, d3 = 4096, 200
    X3 = jax.random.normal(ks[4], (n3, d3), dtype=jnp.float32)
    X3_pert = X3 + 0.5 * jax.random.normal(ks[5], (n3, d3), dtype=jnp.float32)
    ref3 = jnp.clip(X3_pert, X3 - delta, X3 + delta)
    out3 = jax.block_until_ready(Projection(delta, 'linf', X3)(X3_pert))
    assert jnp.allclose(out3, ref3, atol=1e-6), "mismatch vs reference (odd d)"

    print("KERNEL_OK")
</pallas_src>

<mosaic_0001>
module attributes {stable_mosaic.version = 11 : i64} {
  func.func @_linf_kernel(%arg0: memref<1x1xf32, #tpu.memory_space<smem>>, %arg1: memref<16x256xf32, #tpu.memory_space<vmem>>, %arg2: memref<16x256xf32, #tpu.memory_space<vmem>>, %arg3: memref<16x256xf32, #tpu.memory_space<vmem>>) attributes {dimension_semantics = [], scalar_prefetch = 0 : i64, scratch_operands = 0 : i64, tpu.core_type = #tpu.core_type<tc>} {
    %c0 = arith.constant 0 : index
    %c0_0 = arith.constant 0 : index
    %0 = vector.load %arg2[%c0, %c0_0] : memref<16x256xf32, #tpu.memory_space<vmem>>, vector<16x256xf32>
    %c0_1 = arith.constant 0 : index
    %c0_2 = arith.constant 0 : index
    %1 = memref.load %arg0[%c0_1, %c0_2] : memref<1x1xf32, #tpu.memory_space<smem>>
    %c0_3 = arith.constant 0 : index
    %c0_4 = arith.constant 0 : index
    %2 = vector.load %arg1[%c0_3, %c0_4] : memref<16x256xf32, #tpu.memory_space<vmem>>, vector<16x256xf32>
    %3 = vector.broadcast %1 : f32 to vector<16x256xf32>
    %4 = arith.subf %0, %3 : vector<16x256xf32>
    %5 = arith.maximumf %2, %4 : vector<16x256xf32>
    %6 = vector.broadcast %1 : f32 to vector<16x256xf32>
    %7 = arith.addf %0, %6 : vector<16x256xf32>
    %8 = arith.minimumf %5, %7 : vector<16x256xf32>
    %c0_5 = arith.constant 0 : index
    %c0_6 = arith.constant 0 : index
    %9 = vector.load %arg3[%c0_5, %c0_6] : memref<16x256xf32, #tpu.memory_space<vmem>>, vector<16x256xf32>
    tpu.vector_store %arg3[%c0_5, %c0_6], %8 {strides = array<i32>} : memref<16x256xf32, #tpu.memory_space<vmem>>, vector<16x256xf32>,
    return
  }
}

</mosaic_0001>

<bundles_post_ra>
// kernel: tpu_custom_call.1
= control target key start
LH: loop header
LB: loop body
LE: loop exit
PB: predicated region body
PF: predicated region fallthrough
CT: control target
= control target key end

     0   :  { %9 = vsyncpa [#allocation4], 0  ;;  %s198_s0 = inlined_call_operand.<no memory space> [shape: f32[1,1], index: 0, kind: input, shape index: {}]   ;;  %s199_s1 = inlined_call_operand.hbm [shape: f32[16,256], index: 1, kind: input, shape index: {}, may-alias: {1,3}]   ;;  %s200_s2 = inlined_call_operand.vmem [shape: f32[16,256], index: 2, kind: input, shape index: {}]   ;;  %s201_s3 = inlined_call_operand.hbm [shape: f32[16,256], index: 3, kind: output, shape index: {}, may-alias: {1,3}]  }
   0x1   :  { %10 = vsyncpa [#allocation5], 0  ;;  %s129_s12 = smov [#allocation3]   ;;  %s81_s16 = scalar_lea.hbm %s199_s1, 512 }
   0x2   :  { %s18_s13 = sshll.u32 %s129_s12, 4  ;;  %p82_p0 = scmp.ne.s32.totalorder %s199_s1, %s81_s16  ;;  %s19_s13 = int_to_ptr.vmem [resolvable:$true] %s18_s13 }
   0x3   :  { %p85_p1 = scmp.lt.u32.totalorder %s81_s16, %s199_s1 }
   0x5   :  { %p87_p2 = pnand %p85_p1, %p82_p0 }
   0x7   :  { %90 = shalt.err (!%p87_p2)
}
   0x8   :  { %s91_s21 = scalar_lea.vmem %s19_s13, 512  ;;  %p96_p4 = scmp.lt.s32.totalorder %s19_s13, %s19_s13 }
   0x9   :  { %p92_p3 = scmp.ne.s32.totalorder %s19_s13, %s91_s21  ;;  %p97_p5 = scmp.lt.s32.totalorder %s91_s21, %s91_s21 }
   0xb   :  { %p98_p6 = por %p97_p5, %p96_p4 }
   0xd   :  { %p99_p7 = pnand %p98_p6, %p92_p3 }
   0xf   :  { %102 = shalt.err (!%p99_p7)
}
  0x10   :  { %s130_s22 = smov 256   ;;  %s131_s23 = smov 16  }
  0x11   :  { %24 = dma.hbm_to_vmem [thread:$0]  %s199_s1, 512, %s19_s13, [#allocation4], %s130_s22, %s130_s22, %s131_s23  }
  0x12   :  { %125 = dma.done.wait [#allocation4], 512  }
  0x13   :  { %126 = vsyncadd [#allocation4], 4294966784  ;;  %v39_v0 = vstv %s198_s0  ;;  %v30_v1 = vld [vmem:[%s200_s2] sm:$0xff]  ;;  %v31_v3 = vld [vmem:[%s200_s2 + $0x8] sm:$0xff]  ;;  %s132_s7 = smov [#allocation6]  }
  0x14   :  { %v35_v2 = vld [vmem:[#allocation3] sm:$0xff]  ;;  %v40_v4 = vsub.f32 %v30_v1, %v39_v0  ;;  %v48_v5 = vadd.f32 %v39_v0, %v30_v1  ;;  %v36_v6 = vld [vmem:[#allocation3 + $0x8] sm:$0xff]  ;;  %v41_v7 = vsub.f32 %v31_v3, %v39_v0  ;;  %v49_v8 = vadd.f32 %v39_v0, %v31_v3  ;;  %v32_v9 = vld [vmem:[%s200_s2 + $0x10] sm:$0xff]  ;;  %s65_s8 = sshll.u32 %s132_s7, 4  ;;  %s66_s8 = int_to_ptr.vmem [resolvable:$true] %s65_s8 }
  0x15   :  { %v37_v10 = vld [vmem:[#allocation3 + $0x10] sm:$0xff]  ;;  %v42_v11 = vsub.f32 %v32_v9, %v39_v0  ;;  %v50_v12 = vadd.f32 %v39_v0, %v32_v9  ;;  %v33_v13 = vld [vmem:[%s200_s2 + $0x18] sm:$0xff]  ;;  %s103_s9 = scalar_lea.vmem %s66_s8, 512  ;;  %p108_p9 = scmp.lt.s32.totalorder %s66_s8, %s66_s8 }
  0x16   :  { %v38_v14 = vld [vmem:[#allocation3 + $0x18] sm:$0xff]  ;;  %v44_v15 = vmax.f32 %v35_v2, %v40_v4  ;;  %v45_v16 = vmax.f32 %v36_v6, %v41_v7  ;;  %v43_v17 = vsub.f32 %v33_v13, %v39_v0  ;;  %v51_v18 = vadd.f32 %v39_v0, %v33_v13  ;;  %p104_p8 = scmp.ne.s32.totalorder %s66_s8, %s103_s9  ;;  %p109_p10 = scmp.lt.s32.totalorder %s103_s9, %s103_s9 }
  0x17   :  { %v46_v19 = vmax.f32 %v37_v10, %v42_v11 }
  0x18   :  { %v52_v20 = vmin.f32 %v44_v15, %v48_v5  ;;  %v53_v21 = vmin.f32 %v45_v16, %v49_v8  ;;  %v47_v22 = vmax.f32 %v38_v14, %v43_v17  ;;  %p110_p11 = por %p109_p10, %p108_p9 }
  0x19   :  { %v54_v23 = vmin.f32 %v46_v19, %v50_v12 }
  0x1a   :  { %56 = vst [vmem:[#allocation6] sm:$0xff] %v52_v20  ;;  %57 = vst [vmem:[#allocation6 + $0x8] sm:$0xff] %v53_v21  ;;  %v55_v24 = vmin.f32 %v47_v22, %v51_v18  ;;  %p111_p12 = pnand %p110_p11, %p104_p8 }
  0x1b   :  { %58 = vst [vmem:[#allocation6 + $0x10] sm:$0xff] %v54_v23 }
  0x1c   :  { %59 = vst [vmem:[#allocation6 + $0x18] sm:$0xff] %v55_v24 }
  0x1d   :  { %114 = shalt.err (!%p111_p12)
}
  0x1e   :  { %s115_s11 = scalar_lea.hbm %s201_s3, 512 }
  0x1f   :  { %p116_p13 = scmp.ne.s32.totalorder %s201_s3, %s115_s11  ;;  %p119_p0 = scmp.lt.u32.totalorder %s115_s11, %s201_s3 }
  0x21   :  { %p121_p1 = pnand %p119_p0, %p116_p13 }
  0x23   :  { %124 = shalt.err (!%p121_p1)
}
  0x24   :  { %71 = dma.vmem_to_hbm [thread:$0]  %s66_s8, 512, %s201_s3, [#allocation5], %s130_s22, %s130_s22, %s131_s23  }
  0x25   :  { %127 = dma.done.wait [#allocation5], 512  }
  0x26   :  { %128 = vsyncadd [#allocation5], 4294966784 }
  0x27   :  { %75 = vsyncpa [#allocation4], 1 }
  0x28   :  { %76 = vsyncpa [#allocation5], 1 }

</bundles_post_ra>
